<compile_context>
chip_gen: v7x
topology: tpu7x:2x2x1
jax: 0.10.0
libtpu: 0.0.40
codegen_flags: <defaults>
</compile_context>

<pallas_src>
import functools

import numpy as np
import jax
import jax.numpy as jnp
from jax.experimental import pallas as pl
from jax.experimental.pallas import tpu as pltpu

EPS = 1e-5
LANES = 128


def _cpad(c):
    """Channel count padded up to a lane-dense multiple of 128."""
    return max(LANES, ((c + LANES - 1) // LANES) * LANES)


def _pad_axis(a, axis, size):
    pad = [(0, 0)] * a.ndim
    pad[axis] = (0, size - a.shape[axis])
    return jnp.pad(a, pad)


# ----------------------------------------------------------------------------
# Kernel 1: ConvTranspose2d(k=2, s=2, bias) (+ optional fused BN+ReLU on input)
# ----------------------------------------------------------------------------
def _make_upconv_kernel(fuse_bn):
    def kernel(*refs):
        if fuse_bn:
            x_ref, w_ref, b_ref, sc_ref, sh_ref, o_ref = refs
        else:
            x_ref, w_ref, b_ref, o_ref = refs
        x = x_ref[0, 0].astype(jnp.float32)                       # (W, Cinp)
        if fuse_bn:                                               # BN+ReLU of the
            x = jnp.maximum(x * sc_ref[...] + sh_ref[...], 0.0)   # previous stage
        xb = x.astype(jnp.bfloat16)                               # MXU operand
        for di in range(2):                                       # output row 2h+di
            y = jnp.dot(xb, w_ref[di], preferred_element_type=jnp.float32)
            o_ref[0, 0, di] = y + b_ref[...]                      # (W, 2*Coutp)
    return kernel


def upconv2x2(x, w_up, b_up, bn=None):
    """x: (N,H,W,Cinp) f32; w_up: (2, Cinp, 2*Coutp) bf16 (minor = (dj, c));
    b_up: (1, 2*Coutp) f32.  Returns (N, 2H, 2W, Coutp) f32."""
    N, hin, win, cinp = x.shape
    coutp2 = w_up.shape[-1]
    fuse_bn = bn is not None

    in_specs = [
        pl.BlockSpec((1, 1, win, cinp), lambda n, h: (n, h, 0, 0)),
        pl.BlockSpec(w_up.shape, lambda n, h: (0, 0, 0)),
        pl.BlockSpec((1, coutp2), lambda n, h: (0, 0)),
    ]
    args = [x, w_up, b_up]
    if fuse_bn:
        in_specs += [pl.BlockSpec((1, cinp), lambda n, h: (0, 0)),
                     pl.BlockSpec((1, cinp), lambda n, h: (0, 0))]
        args += [bn[0], bn[1]]

    out = pl.pallas_call(
        _make_upconv_kernel(fuse_bn),
        out_shape=jax.ShapeDtypeStruct((N, hin, 2, win, coutp2), jnp.float32),
        grid=(N, hin),
        in_specs=in_specs,
        out_specs=pl.BlockSpec((1, 1, 2, win, coutp2),
                               lambda n, h: (n, h, 0, 0, 0)),
        compiler_params=pltpu.CompilerParams(
            dimension_semantics=("parallel", "parallel")),
    )(*args)
    # (N, H, di, W, (dj, c)) -> (N, 2H, 2W, C): contiguous, free reshape.
    return out.reshape(N, 2 * hin, 2 * win, coutp2 // 2)


# ----------------------------------------------------------------------------
# Kernel 2: fused-im2col 3x3 "same" conv (no bias) over 1..n inputs (split-K
# replaces the channel concat), optional fused BN+ReLU per input at load time,
# and per-grid-step emission of BatchNorm partial moments of the conv output.
# ----------------------------------------------------------------------------
def _row_shift_map(n, r, kh, hin):
    rr = jnp.minimum(jnp.maximum(r + kh - 1, 0), hin - 1)
    return (n, rr, 0, 0)


def _make_conv_kernel(n_inputs, has_bn, hin, win, coutp):
    def kernel(*refs):
        i = 0
        rows = []
        for _ in range(n_inputs):
            rows.append(refs[i:i + 3])
            i += 3
        ws = refs[i:i + n_inputs]
        i += n_inputs
        bn = []
        for j in range(n_inputs):
            if has_bn[j]:
                bn.append((refs[i], refs[i + 1]))
                i += 2
            else:
                bn.append(None)
        y_ref, s_ref, q_ref = refs[i:i + 3]

        r = pl.program_id(1)

        acc = jnp.zeros((win, coutp), jnp.float32)
        for j in range(n_inputs):
            cinp_j = rows[j][0].shape[-1]
            zcol = jnp.zeros((1, cinp_j), jnp.float32)
            for kh in range(3):
                row = rows[j][kh][0, 0].astype(jnp.float32)        # (win, cinp_j)
                if bn[j] is not None:                              # fused BN+ReLU
                    sc, sh = bn[j]                                 # of the producer
                    row = jnp.maximum(row * sc[...] + sh[...], 0.0)
                # zero rows that fall into the "same"-padding border
                rr = r + kh - 1
                valid = jnp.logical_and(rr >= 0, rr < hin).astype(jnp.float32)
                row = row * valid
                # synthesize the left/right zero-pad columns in VMEM
                rowp = jnp.concatenate([zcol, row, zcol], axis=0)  # (win+2, cinp_j)
                for kw in range(3):
                    acc = acc + jnp.dot(
                        rowp[kw:kw + win, :].astype(jnp.bfloat16),
                        ws[j][kh, kw],
                        preferred_element_type=jnp.float32)
        y_ref[0, 0] = acc
        # Per-grid-step BatchNorm partial moments (reduced in the wrapper).
        # Keeping these per-step (instead of a grid-resident accumulator) keeps
        # both grid axes "parallel" -> megacore-shardable on v7x.
        s_ref[0, 0] = jnp.sum(acc, axis=0, keepdims=True)
        q_ref[0, 0] = jnp.sum(acc * acc, axis=0, keepdims=True)
    return kernel


def conv3x3_bn_stats(inputs, weights, bn_scale_shift, coutp):
    """Returns (raw conv output, per-channel sum, per-channel sum-of-squares)."""
    N, hin, win, _ = inputs[0].shape
    n_inputs = len(inputs)
    has_bn = [ss is not None for ss in bn_scale_shift]

    in_specs, args = [], []
    for x in inputs:
        cinp_j = x.shape[-1]
        for kh in range(3):
            in_specs.append(pl.BlockSpec(
                (1, 1, win, cinp_j),
                functools.partial(_row_shift_map, kh=kh, hin=hin)))
            args.append(x)
    for w in weights:
        in_specs.append(pl.BlockSpec(w.shape, lambda n, r: (0, 0, 0, 0)))
        args.append(w)
    for ss in bn_scale_shift:
        if ss is not None:
            for v in ss:
                in_specs.append(pl.BlockSpec((1, v.shape[-1]),
                                             lambda n, r: (0, 0)))
                args.append(v)

    y, s_p, q_p = pl.pallas_call(
        _make_conv_kernel(n_inputs, has_bn, hin, win, coutp),
        out_shape=(jax.ShapeDtypeStruct((N, hin, win, coutp), jnp.float32),
                   jax.ShapeDtypeStruct((N, hin, 1, coutp), jnp.float32),
                   jax.ShapeDtypeStruct((N, hin, 1, coutp), jnp.float32)),
        grid=(N, hin),
        in_specs=in_specs,
        out_specs=(pl.BlockSpec((1, 1, win, coutp), lambda n, r: (n, r, 0, 0)),
                   pl.BlockSpec((1, 1, 1, coutp), lambda n, r: (n, r, 0, 0)),
                   pl.BlockSpec((1, 1, 1, coutp), lambda n, r: (n, r, 0, 0))),
        compiler_params=pltpu.CompilerParams(
            dimension_semantics=("parallel", "parallel")),
    )(*args)
    # Tiny O(N*H*C) finalization reduction (negligible vs. activation traffic).
    s = jnp.sum(s_p, axis=(0, 1))                                  # (1, coutp)
    q = jnp.sum(q_p, axis=(0, 1))                                  # (1, coutp)
    return y, s, q


# ----------------------------------------------------------------------------
# Kernel 3: tiled normalize + ReLU (only used for the final network output)
# ----------------------------------------------------------------------------
def _bn_relu_kernel(x_ref, sc_ref, sh_ref, o_ref):
    x = x_ref[0, 0].astype(jnp.float32)
    o_ref[0, 0] = jnp.maximum(x * sc_ref[...] + sh_ref[...], 0.0)


def bn_relu_apply(y, scale, shift):
    N, H, W, C = y.shape
    return pl.pallas_call(
        _bn_relu_kernel,
        out_shape=jax.ShapeDtypeStruct((N, H, W, C), jnp.float32),
        grid=(N, H),
        in_specs=[pl.BlockSpec((1, 1, W, C), lambda n, h: (n, h, 0, 0)),
                  pl.BlockSpec((1, C), lambda n, h: (0, 0)),
                  pl.BlockSpec((1, C), lambda n, h: (0, 0))],
        out_specs=pl.BlockSpec((1, 1, W, C), lambda n, h: (n, h, 0, 0)),
        compiler_params=pltpu.CompilerParams(
            dimension_semantics=("parallel", "parallel")),
    )(y, scale, shift)


def _bn_scale_shift(csum, csumsq, count, gamma, beta):
    # O(C) finalization of the accumulated moments (biased variance,
    # training-mode BatchNorm).  gamma/beta are zero on padded lanes, so padded
    # lanes stay exactly zero through the whole network.
    mean = csum / count
    var = csumsq / count - mean * mean
    scale = gamma * jax.lax.rsqrt(var + EPS)
    shift = beta - mean * scale
    return scale, shift


# ----------------------------------------------------------------------------
# Module forward (Pallas-backed, NCHW in / NCHW out like the PyTorch module)
# ----------------------------------------------------------------------------
def expand_path(x_nchw, encoder_features_nchw, params):
    x = jnp.transpose(x_nchw, (0, 2, 3, 1))                       # NCHW -> NHWC
    z = _pad_axis(x, 3, _cpad(x.shape[3]))                        # lane-dense pad
    bn_prev = None                                                # BN of prev stage
    for i, p in enumerate(params):
        # ConvTranspose2d(k=2,s=2) (+ fused BN2+ReLU of the previous stage)
        u = upconv2x2(z, p["up_w"], p["up_b"], bn=bn_prev)        # (N,2H,2W,Coutp)
        e = jnp.transpose(encoder_features_nchw[i], (0, 2, 3, 1))
        e = _pad_axis(e, 3, _cpad(e.shape[3]))
        nb, hc, wc, _ = u.shape
        cnt = float(nb * hc * wc)                                 # global BN count
        # conv1 over [u, e] (split-K instead of channel concat) + BN1 moments
        y1, s1, q1 = conv3x3_bn_stats([u, e], [p["w1a"], p["w1b"]],
                                      [None, None], p["coutp"])
        sc1, sh1 = _bn_scale_shift(s1, q1, cnt, p["g1"], p["b1"])
        # conv2 consumes raw conv1 output with BN1+ReLU fused into its load
        y2, s2, q2 = conv3x3_bn_stats([y1], [p["w2"]], [(sc1, sh1)], p["coutp"])
        bn_prev = _bn_scale_shift(s2, q2, cnt, p["g2"], p["b2"])
        z = y2
    # only the network output needs a standalone normalize+ReLU pass
    out = bn_relu_apply(z, bn_prev[0], bn_prev[1])
    out = out[:, :, :, :params[-1]["cout"]]
    return jnp.transpose(out, (0, 3, 1, 2))                       # NHWC -> NCHW


# ----------------------------------------------------------------------------
# Deterministic parameter init (synthetic -- shapes follow the PyTorch module)
# ----------------------------------------------------------------------------
def init_params(chs, key):
    params = []
    for i in range(len(chs) - 1):
        cin, cout = chs[i], chs[i + 1]
        key, *ks = jax.random.split(key, 8)
        params.append(dict(
            # ConvTranspose2d(cin, cout, 2, 2): weight (cin, cout, 2, 2), bias (cout,)
            up_w=jax.random.normal(ks[0], (cin, cout, 2, 2), jnp.float32)
                 * (1.0 / np.sqrt(cin * 4)),
            up_b=jax.random.normal(ks[1], (cout,), jnp.float32) * 0.1,
            # DbleConvBlock(cin, cout): conv weights stored as (kh, kw, Cin, Cout)
            w1=jax.random.normal(ks[2], (3, 3, cin, cout), jnp.float32)
               * (1.0 / np.sqrt(cin * 9)),
            w2=jax.random.normal(ks[3], (3, 3, cout, cout), jnp.float32)
               * (1.0 / np.sqrt(cout * 9)),
            g1=1.0 + 0.1 * jax.random.normal(ks[4], (1, cout), jnp.float32),
            b1=0.1 * jax.random.normal(ks[5], (1, cout), jnp.float32),
            g2=1.0 + 0.1 * jax.random.normal(ks[6], (1, cout), jnp.float32),
            b2=jnp.zeros((1, cout), jnp.float32),
        ))
    return params


def prepare_params(raw, chs):
    """Pad / re-layout the raw parameters into kernel-ready lane-dense form."""
    prepared = []
    for i, p in enumerate(raw):
        cin, cout = chs[i], chs[i + 1]
        ce = cin - cout
        cinp, coutp, cep = _cpad(cin), _cpad(cout), _cpad(ce)

        # ConvTranspose2d weight (cin, cout, di, dj) -> (di, cinp, dj*coutp) bf16
        w = jnp.transpose(p["up_w"], (2, 0, 3, 1))             # (di, cin, dj, cout)
        w = _pad_axis(_pad_axis(w, 1, cinp), 3, coutp)
        up_w = w.reshape(2, cinp, 2 * coutp).astype(jnp.bfloat16)
        up_b = jnp.tile(_pad_axis(p["up_b"].reshape(1, cout), 1, coutp), (1, 2))

        # conv1 weight split over [upconv output (cout ch), encoder (ce ch)]
        w1a = _pad_axis(_pad_axis(p["w1"][:, :, :cout, :], 2, coutp), 3, coutp)
        w1b = _pad_axis(_pad_axis(p["w1"][:, :, cout:, :], 2, cep), 3, coutp)
        w2 = _pad_axis(_pad_axis(p["w2"], 2, coutp), 3, coutp)

        prepared.append(dict(
            up_w=up_w, up_b=up_b,
            w1a=w1a.astype(jnp.bfloat16), w1b=w1b.astype(jnp.bfloat16),
            w2=w2.astype(jnp.bfloat16),
            g1=_pad_axis(p["g1"], 1, coutp), b1=_pad_axis(p["b1"], 1, coutp),
            g2=_pad_axis(p["g2"], 1, coutp), b2=_pad_axis(p["b2"], 1, coutp),
            cout=cout, coutp=coutp))
    return prepared


# ----------------------------------------------------------------------------
# Pure-JAX f32 reference (for correctness check of the Pallas path)
# ----------------------------------------------------------------------------
def _ref_conv3x3(x, w):
    N, H, W, Cin = x.shape
    xpad = jnp.pad(x, ((0, 0), (1, 1), (1, 1), (0, 0)))
    out = 0.0
    for kh in range(3):
        for kw in range(3):
            out = out + jnp.einsum('nhwc,co->nhwo',
                                   xpad[:, kh:kh + H, kw:kw + W, :], w[kh, kw])
    return out


def _ref_bn_relu(x, gamma, beta):
    mean = jnp.mean(x, axis=(0, 1, 2), keepdims=True)
    var = jnp.mean((x - mean) ** 2, axis=(0, 1, 2), keepdims=True)
    y = (x - mean) * jax.lax.rsqrt(var + EPS) * gamma.reshape(1, 1, 1, -1) \
        + beta.reshape(1, 1, 1, -1)
    return jnp.maximum(y, 0.0)


def ref_expand_path(x_nchw, enc_nchw, params):
    x = jnp.transpose(x_nchw, (0, 2, 3, 1))
    for i, p in enumerate(params):
        y = jnp.einsum('nhwc,cokl->nhwklo', x, p["up_w"]) + p["up_b"]
        N, H, W, _, _, Cout = y.shape
        x = y.transpose(0, 1, 3, 2, 4, 5).reshape(N, 2 * H, 2 * W, Cout)
        e = jnp.transpose(enc_nchw[i], (0, 2, 3, 1))
        x = jnp.concatenate([x, e], axis=-1)
        x = _ref_bn_relu(_ref_conv3x3(x, p["w1"]), p["g1"], p["b1"])
        x = _ref_bn_relu(_ref_conv3x3(x, p["w2"]), p["g2"], p["b2"])
    return jnp.transpose(x, (0, 3, 1, 2))


# ----------------------------------------------------------------------------
if __name__ == "__main__":
    key = jax.random.PRNGKey(0)
    chs = (32, 16, 8, 4, 2)           # scaled-down UNet decoder channels
    N, H0, W0 = 2, 2, 2               # bottleneck spatial size; output = 32x32

    kx, ke, kp = jax.random.split(key, 3)
    x = jax.random.normal(kx, (N, chs[0], H0, W0), jnp.float32)   # NCHW like PyTorch

    # encoder skip features: channels = chs[i] - chs[i+1], spatial doubles/stage
    enc = []
    for i in range(len(chs) - 1):
        ke, sub = jax.random.split(ke)
        s = H0 * (2 ** (i + 1))
        enc.append(jax.random.normal(
            sub, (N, chs[i] - chs[i + 1], s, s), jnp.float32))

    raw = init_params(chs, kp)
    params = prepare_params(raw, chs)

    out = jax.block_until_ready(expand_path(x, enc, params))
    assert out.shape == (N, chs[-1], H0 * 16, W0 * 16), out.shape

    ref = jax.block_until_ready(ref_expand_path(x, enc, raw))
    # bf16 MXU operands (f32 accumulation) over 12 matmul layers + BatchNorm
    # renormalization -> allow a few % absolute/relative slack vs f32 reference.
    np.testing.assert_allclose(np.asarray(out), np.asarray(ref),
                               rtol=5e-2, atol=5e-2)

    print("KERNEL_OK")
</pallas_src>

<mosaic_0001>
module attributes {stable_mosaic.version = 11 : i64} {
  func.func @kernel(%arg0: i32, %arg1: i32, %arg2: memref<1x1x2x128xf32, #tpu.memory_space<vmem>>, %arg3: memref<2x128x256xbf16, #tpu.memory_space<vmem>>, %arg4: memref<1x256xf32, #tpu.memory_space<vmem>>, %arg5: memref<1x1x2x2x256xf32, #tpu.memory_space<vmem>>) attributes {dimension_semantics = [#tpu.dimension_semantics<parallel>, #tpu.dimension_semantics<parallel>], iteration_bounds = array<i64: 2, 2>, scalar_prefetch = 0 : i64, scratch_operands = 0 : i64, tpu.core_type = #tpu.core_type<tc>, window_params = [{transform_indices = @transform_0, window_bounds = array<i64: 1, 1, 2, 128>}, {pipeline_mode = #tpu.pipeline_mode<synchronous>, transform_indices = @transform_1, window_bounds = array<i64: 2, 128, 256>}, {pipeline_mode = #tpu.pipeline_mode<synchronous>, transform_indices = @transform_2, window_bounds = array<i64: 1, 256>}, {transform_indices = @transform_3, window_bounds = array<i64: 1, 1, 2, 2, 256>}]} {
    %c0 = arith.constant 0 : index
    %c0_0 = arith.constant 0 : index
    %c0_1 = arith.constant 0 : index
    %c0_2 = arith.constant 0 : index
    %0 = vector.load %arg2[%c0, %c0_0, %c0_1, %c0_2] : memref<1x1x2x128xf32, #tpu.memory_space<vmem>>, vector<1x1x2x128xf32>
    %1 = vector.shape_cast %0 : vector<1x1x2x128xf32> to vector<2x128xf32>
    %2 = arith.truncf %1 : vector<2x128xf32> to vector<2x128xbf16>
    %c0_3 = arith.constant 0 : index
    %c0_4 = arith.constant 0 : index
    %c0_5 = arith.constant 0 : index
    %3 = vector.load %arg3[%c0_3, %c0_4, %c0_5] : memref<2x128x256xbf16, #tpu.memory_space<vmem>>, vector<1x128x256xbf16>
    %4 = vector.shape_cast %3 : vector<1x128x256xbf16> to vector<128x256xbf16>
    %cst = arith.constant dense<0.000000e+00> : vector<2x256xf32>
    %5 = tpu.matmul %2, %4, %cst {dimension_numbers = #tpu.dot_dimension_numbers<[1], [0], [0], [1], [0, 0, 1, 1], [], []>} : vector<2x128xbf16>, vector<128x256xbf16>, vector<2x256xf32> -> vector<2x256xf32>
    %c0_6 = arith.constant 0 : index
    %c0_7 = arith.constant 0 : index
    %6 = vector.load %arg4[%c0_6, %c0_7] : memref<1x256xf32, #tpu.memory_space<vmem>>, vector<1x256xf32>
    %7 = vector.broadcast %6 : vector<1x256xf32> to vector<2x256xf32>
    %8 = arith.addf %5, %7 : vector<2x256xf32>
    %c0_8 = arith.constant 0 : index
    %c0_9 = arith.constant 0 : index
    %c0_10 = arith.constant 0 : index
    %c0_11 = arith.constant 0 : index
    %c0_12 = arith.constant 0 : index
    %9 = vector.load %arg5[%c0_8, %c0_9, %c0_10, %c0_11, %c0_12] : memref<1x1x2x2x256xf32, #tpu.memory_space<vmem>>, vector<1x1x1x2x256xf32>
    %10 = vector.shape_cast %9 : vector<1x1x1x2x256xf32> to vector<2x256xf32>
    %11 = vector.shape_cast %8 : vector<2x256xf32> to vector<1x1x1x2x256xf32>
    tpu.vector_store %arg5[%c0_8, %c0_9, %c0_10, %c0_11, %c0_12], %11 {strides = array<i32>} : memref<1x1x2x2x256xf32, #tpu.memory_space<vmem>>, vector<1x1x1x2x256xf32>,
    %c1 = arith.constant 1 : index
    %c0_13 = arith.constant 0 : index
    %c0_14 = arith.constant 0 : index
    %12 = vector.load %arg3[%c1, %c0_13, %c0_14] : memref<2x128x256xbf16, #tpu.memory_space<vmem>>, vector<1x128x256xbf16>
    %13 = vector.shape_cast %12 : vector<1x128x256xbf16> to vector<128x256xbf16>
    %cst_15 = arith.constant dense<0.000000e+00> : vector<2x256xf32>
    %14 = tpu.matmul %2, %13, %cst_15 {dimension_numbers = #tpu.dot_dimension_numbers<[1], [0], [0], [1], [0, 0, 1, 1], [], []>} : vector<2x128xbf16>, vector<128x256xbf16>, vector<2x256xf32> -> vector<2x256xf32>
    %c0_16 = arith.constant 0 : index
    %c0_17 = arith.constant 0 : index
    %15 = vector.load %arg4[%c0_16, %c0_17] : memref<1x256xf32, #tpu.memory_space<vmem>>, vector<1x256xf32>
    %16 = vector.broadcast %15 : vector<1x256xf32> to vector<2x256xf32>
    %17 = arith.addf %14, %16 : vector<2x256xf32>
    %c0_18 = arith.constant 0 : index
    %c0_19 = arith.constant 0 : index
    %c1_20 = arith.constant 1 : index
    %c0_21 = arith.constant 0 : index
    %c0_22 = arith.constant 0 : index
    %18 = vector.load %arg5[%c0_18, %c0_19, %c1_20, %c0_21, %c0_22] : memref<1x1x2x2x256xf32, #tpu.memory_space<vmem>>, vector<1x1x1x2x256xf32>
    %19 = vector.shape_cast %18 : vector<1x1x1x2x256xf32> to vector<2x256xf32>
    %20 = vector.shape_cast %17 : vector<2x256xf32> to vector<1x1x1x2x256xf32>
    tpu.vector_store %arg5[%c0_18, %c0_19, %c1_20, %c0_21, %c0_22], %20 {strides = array<i32>} : memref<1x1x2x2x256xf32, #tpu.memory_space<vmem>>, vector<1x1x1x2x256xf32>,
    return
  }
  func.func @transform_0(%arg0: i32, %arg1: i32) -> (i32, i32, i32, i32) {
    %c0_i32 = arith.constant 0 : i32
    %c0_i32_0 = arith.constant 0 : i32
    %c0_i32_1 = arith.constant 0 : i32
    return %arg0, %arg1, %c0_i32, %c0_i32_0 : i32, i32, i32, i32
  }
  func.func @transform_1(%arg0: i32, %arg1: i32) -> (i32, i32, i32) {
    %c0_i32 = arith.constant 0 : i32
    %c0_i32_0 = arith.constant 0 : i32
    %c0_i32_1 = arith.constant 0 : i32
    %c0_i32_2 = arith.constant 0 : i32
    return %c0_i32, %c0_i32_0, %c0_i32_1 : i32, i32, i32
  }
  func.func @transform_2(%arg0: i32, %arg1: i32) -> (i32, i32) {
    %c0_i32 = arith.constant 0 : i32
    %c0_i32_0 = arith.constant 0 : i32
    %c0_i32_1 = arith.constant 0 : i32
    return %c0_i32, %c0_i32_0 : i32, i32
  }
  func.func @transform_3(%arg0: i32, %arg1: i32) -> (i32, i32, i32, i32, i32) {
    %c0_i32 = arith.constant 0 : i32
    %c0_i32_0 = arith.constant 0 : i32
    %c0_i32_1 = arith.constant 0 : i32
    %c0_i32_2 = arith.constant 0 : i32
    return %arg0, %arg1, %c0_i32, %c0_i32_0, %c0_i32_1 : i32, i32, i32, i32, i32
  }
}

</mosaic_0001>

<bundles_post_ra>
// kernel: tpu_custom_call.1
= control target key start
LH: loop header
LB: loop body
LE: loop exit
PB: predicated region body
PF: predicated region fallthrough
CT: control target
= control target key end

     0   :  { %s1296_s0 = inlined_call_operand.hbm [shape: f32[2,2,2,128], index: 0, kind: input, shape index: {}]   ;;  %s1297_s1 = inlined_call_operand.hbm [shape: bf16[2,128,256], index: 1, kind: input, shape index: {}]   ;;  %s1298_s2 = inlined_call_operand.vmem [shape: f32[1,256], index: 2, kind: input, shape index: {}]   ;;  %s1299_s3 = inlined_call_operand.hbm [shape: f32[2,2,2,2,256], index: 3, kind: output, shape index: {}]  }
   0x1   :  { %1307 = sst [smem:[#allocation14_spill]] %s1297_s1 }
   0x2   :  { %8 = vsyncpa [#allocation3], 0 }
   0x3   :  { %10 = vsyncpa [#allocation3 + $0x1], 0 }
   0x4   :  { %11 = vsyncpa [#allocation6], 0 }
   0x5   :  { %12 = vsyncpa [#allocation4], 0 }
   0x6   :  { %14 = vsyncpa [#allocation4 + $0x1], 0  ;;  %s1046_s12 = smov 0   ;;  %s1048_s13 = smov 0  }
   0x7   :  { %s1050_s14 = smov 0   ;;  %s1052_s15 = smov 0  }
   0x8   :  { %s1054_s16 = smov 0   ;;  %s1056_s17 = smov 0  }
   0x9   :  { %s1058_s18 = smov 0   ;;  %s1060_s19 = smov 0  }
   0xa LB: > { %1308 = sst [smem:[#allocation11_spill]] %s988_s12  ;;  %s661_s20 = sadd.s32 4294967295, %s1016_s19   ;;  %s1016_s19 = sphi %s1060_s19, %s20_s19   ;;  %s1012_s18 = sphi %s1058_s18, %s1335_s18   ;;  %s1008_s17 = sphi %s1056_s17, %s1334_s17   ;;  %s1004_s16 = sphi %s1054_s16, %s1333_s16   ;;  %s1000_s15 = sphi %s1052_s15, %s1332_s15   ;;  %s996_s14 = sphi %s1050_s14, %s1331_s14   ;;  %s992_s13 = sphi %s1048_s13, %s1330_s13   ;;  %s988_s12 = sphi %s1046_s12, %s1329_s12  }
   0xb   : > { %s662_s21 = sadd.s32 4294967294, %s1016_s19   ;;  %p54_p0 = scmp.ne.s32.totalorder %s992_s13, %s988_s12 }
   0xc   : > { %p1090_p1 = scmp.eq.s32.totalorder %s661_s20, 0  ;;  %p1094_p2 = scmp.eq.s32.totalorder %s661_s20, 3 }
   0xd   : > { %p128_p3 = scmp.eq.s32.totalorder %s662_s21, 3  ;;  %p663_p5 = scmp.ge.s32.totalorder %s1016_s19, 1 }
   0xe   : > { %s1309_s22 = scalar_select %p1090_p1, 1, 0 }
   0xf   : > { %s1310_s23 = scalar_select %p1094_p2, 1, 0 }
  0x10   : > { %p1100_p4 = por %p1090_p1, %p54_p0  ;;  %p1105_p6 = por %p128_p3, %p54_p0 }
  0x11   : > { %p135_p7 = scmp.lt.s32.totalorder %s1016_s19, 5  ;;  %s1018_s27 = smov [#allocation5]  }
  0x12   : > { %s1311_s24 = scalar_select %p1100_p4, 1, 0 }
  0x13   : > { %s1312_s25 = scalar_select %p1105_p6, 1, 0 }
  0x14   : > { %p1110_p8 = pnand %p663_p5, %p135_p7  ;;  %s147_s28 = sshll.u32 %s1018_s27, 4  ;;  %s148_s28 = int_to_ptr.vmem [resolvable:$true] %s147_s28 }
  0x15   : > { %1313 = sst [smem:[#allocation12_spill]] %s1312_s25  ;;  %s1316_s1 = sld [smem:[#allocation14_spill]] }
  0x16   : > { %s1314_s26 = scalar_select %p1110_p8, 1, 0 }
  0x17   : > { %p722_p9 = pneg %p1110_p8 }
  0x19   : > { %p1118_p10 = pnand %p722_p9, %p1090_p1 }
  0x1b   : > { %s856_s5 = scalar_lea.hbm %s1316_s1, 4096  ;;  %p858_p12 = pneg %p1118_p10 }
  0x1c   : > { %p857_p11 = scmp.ne.s32.totalorder %s1316_s1, %s856_s5  ;;  %p863_p3 = scmp.lt.u32.totalorder %s856_s5, %s1316_s1 }
  0x1e   : > { %p859_p13 = pnand %p858_p12, %p857_p11 }
  0x20   : > { %p860_p0 = pneg %p859_p13 }
  0x22   : > { %p865_p5 = pnand %p863_p3, %p860_p0 }
  0x24   : > { %868 = shalt.err (!%p865_p5)
}
  0x25   : > { %s869_s10 = scalar_lea.vmem %s148_s28, 4096  ;;  %p877_p1 = scmp.lt.s32.totalorder %s148_s28, %s148_s28 }
  0x26   : > { %p870_p7 = scmp.ne.s32.totalorder %s148_s28, %s869_s10  ;;  %p878_p4 = scmp.lt.s32.totalorder %s869_s10, %s869_s10 }
  0x28   : > { %p872_p9 = pnand %p870_p7, %p858_p12  ;;  %p879_p8 = por %p878_p4, %p877_p1 }
  0x2a   : > { %p873_p6 = pneg %p872_p9 }
  0x2c   : > { %p880_p2 = pnand %p879_p8, %p873_p6 }
  0x2e   : > { %883 = shalt.err (!%p880_p2)
}
  0x2f   : > { %s1019_s11 = smov 128   ;;  %s1020_s20 = smov 8  }
  0x30   : > { %725 = dma.hbm_to_vmem [thread:$0]  (!%p1118_p10), %s1316_s1, 4096, %s148_s28, [#allocation6], %s1019_s11, %s1019_s11, %s1020_s20  }
  0x31   : > { %s29_s30 = sadd.s32 1, %s1008_s17  ;;  %s32_s4 = sadd.s32 1, %s1012_s18 }
  0x32   : > { %p30_p1 = scmp.ge.s32.totalorder %s29_s30, 2  ;;  %s41_s5 = sadd.s32 1, %s996_s14 }
  0x33   : > { %p48_p2 = scmp.ne.s32.totalorder %s996_s14, %s992_s13  ;;  %p49_p4 = scmp.eq.s32.totalorder %s1016_s19, 0 }
  0x34   : > { %s1337_s30 = smov (%p30_p1, %s29_s30), 0  ;;  %s1339_s4 = smov (!%p30_p1, %s32_s4), %s1012_s18 }
  0x35   : > { %1317 = sst [smem:[#allocation13_spill]] %s1337_s30  ;;  %s37_s6 = ssub.s32 %s1008_s17, %s1337_s30 }
  0x36   : > { %p34_p6 = scmp.ge.s32.totalorder %s1339_s4, 2  ;;  %p1318_p8 = scmp.ne.s32.totalorder %s1310_s23, 0 }
  0x37   : > { %p1155_p10 = por %p49_p4, %p48_p2  ;;  %p735_p12 = scmp.lt.s32.totalorder %s1016_s19, 4 }
  0x38   : > { %p1151_p11 = por %p1318_p8, %p48_p2  ;;  %s1341_s4 = smov (%p34_p6, %s1339_s4), 0 }
  0x39   : > { %s164_s7 = sand.u32 1, %s996_s14   ;;  %s667_s8 = sshll.u32 %s1012_s18, 1 }
  0x3a   : > { %s36_s9 = ssub.s32 %s1012_s18, %s1341_s4  ;;  %s666_s11 = sshll.u32 %s164_s7, 1 }
  0x3b   : > { %s38_s10 = sor.u32 %s37_s6, %s36_s9  ;;  %s173_s23 = sadd.s32 %s1008_s17, %s667_s8 }
  0x3c   : > { %p39_p13 = scmp.eq.s32.totalorder %s38_s10, 0  ;;  %s168_s20 = scalar_lea.vmem [#allocation2], %s666_s11 }
  0x3d   : > { %s177_s21 = sshll.u32 %s168_s20, 4  ;;  %s668_s1 = sshll.u32 %s173_s23, 5  ;;  %s1170_s21 = int_to_ptr.vmem [resolvable:$true] %s177_s21 }
  0x3e   : > { %s1168_s27 = scalar_select %p39_p13, %s996_s14, %s41_s5  }
  0x3f   : > { %s1175_s12 = scalar_lea.hbm %s1296_s0, %s668_s1  ;;  %p1181_p0 = pnand %p735_p12, %p1155_p10 }
  0x40   : > { %s165_s5 = scalar_lea.sflag [#allocation3], %s164_s7  ;;  %s884_s8 = scalar_lea.hbm %s1175_s12, 32 }
  0x41   : > { %p885_p3 = scmp.ne.s32.totalorder %s1175_s12, %s884_s8  ;;  %p886_p5 = pneg %p1181_p0 }
  0x42   : > { %s889_s30 = scalar_lea.hbm %s1296_s0, 128  ;;  %p890_p1 = scmp.lt.u32.totalorder %s1175_s12, %s1296_s0 }
  0x43   : > { %p887_p7 = pnand %p886_p5, %p885_p3  ;;  %p891_p2 = scmp.lt.u32.totalorder %s889_s30, %s884_s8 }
  0x44   : > { %p893_p6 = scmp.lt.u32.totalorder %s884_s8, %s1175_s12 }
  0x45   : > { %p888_p9 = pneg %p887_p7  ;;  %p892_p4 = por %p891_p2, %p890_p1 }
  0x47   : > { %p894_p8 = por %p893_p6, %p892_p4 }
  0x49   : > { %p895_p10 = pnand %p894_p8, %p888_p9 }
  0x4b   : > { %898 = shalt.err (!%p895_p10)
}
  0x4c   : > { %s899_s7 = scalar_lea.vmem %s1170_s21, 32  ;;  %s1021_s10 = smov [#allocation2]  }
  0x4d   : > { %p900_p12 = scmp.ne.s32.totalorder %s1170_s21, %s899_s7  ;;  %s904_s11 = sshll.u32 %s1021_s10, 4  ;;  %s905_s11 = int_to_ptr.vmem [resolvable:$false] %s904_s11 }
  0x4e   : > { %s906_s23 = scalar_lea.vmem %s905_s11, 64  ;;  %p907_p7 = scmp.lt.s32.totalorder %s1170_s21, %s905_s11 }
  0x4f   : > { %p902_p13 = pnand %p900_p12, %p886_p5  ;;  %p908_p1 = scmp.lt.s32.totalorder %s906_s23, %s899_s7 }
  0x51   : > { %p903_p3 = pneg %p902_p13  ;;  %p909_p2 = por %p908_p1, %p907_p7 }
  0x53   : > { %p910_p4 = pnand %p909_p2, %p903_p3 }
  0x55   : > { %913 = shalt.err (!%p910_p4)
}
  0x56   : > { %729 = dma.hbm_to_vmem [thread:$0]  (!%p1181_p0), %s1175_s12, 32, %s1170_s21, %s165_s5  }
  0x57   : > { %p1322_p9 = scmp.ne.s32.totalorder %s1314_s26, 0 }
  0x58   : > { %s1213_s20 = sand.u32 (!%p1322_p9), 1, %s992_s13   ;;  %p1323_p5 = scmp.ne.s32.totalorder (!%p1322_p9), %s1311_s24, 0 }
  0x59   : > { %186 = sbr.rel (%p1322_p9) target bundleno = 367 (0x16f), region = 32  ;;  %s670_s8 = sshll.u32 (!%p1322_p9), %s1213_s20, 1 }
  0x5a   : > { %s189_s1 = scalar_lea.sflag (!%p1322_p9), [#allocation3], %s1213_s20  ;;  %s1217_s25 = scalar_lea.vmem (!%p1322_p9), [#allocation2], %s670_s8 }
  0x60   : > { %975 = dma.done.wait (%p1323_p5), %s189_s1, 32  }
  0x61   : > { %977 = vsyncadd (%p1323_p5), %s189_s1, 4294967264  ;;  %p1324_p0 = scmp.ne.s32.totalorder %s1309_s22, 0 }
  0x63   : > { %979 = dma.done.wait (%p1324_p0), [#allocation6], 4096  }
  0x64   : > { %981 = vsyncadd (%p1324_p0), [#allocation6], 4294963200  ;;  %v1022_v0 = vmov 0   ;;  %v808_v1 = vld [vmem:[#allocation5 + $0x4] ss:$8 sps:$4 sm:$0xff]   ;;  %v240_v35 = vlaneseq  ;;  %s672_s24 = sshll.u32 %s1213_s20, 3 }
  0x65   : > { %362 = vmatprep.mubr.bf16.mxu0 %v1022_v0  ;;  %524 = vmatprep.mubr.bf16.mxu1 %v1022_v0  ;;  %v810_v2 = vld [vmem:[#allocation5 + $0x84] ss:$8 sps:$4 sm:$0xff]   ;;  %v812_v3 = vld [vmem:[#allocation5] ss:$8 sps:$4 sm:$0xff]   ;;  %v814_v5 = vld [vmem:[#allocation5 + $0x14] ss:$8 sps:$4 sm:$0xff]  }
  0x66   : > { %330 = vmatprep.subr.bf16.mxu0 %v808_v1  ;;  %v813_v4 = vld [vmem:[#allocation5 + $0x80] ss:$8 sps:$4 sm:$0xff]   ;;  %492 = vmatprep.subr.bf16.mxu1 %v810_v2  ;;  %v816_v6 = vld [vmem:[#allocation5 + $0x94] ss:$8 sps:$4 sm:$0xff]   ;;  %v818_v7 = vld [vmem:[#allocation5 + $0x10] ss:$8 sps:$4 sm:$0xff]  }
  0x67   : > { %331 = vmatpush1.bf16.msra.mxu0 %v812_v3  ;;  %493 = vmatpush1.bf16.msra.mxu1 %v813_v4  ;;  %v819_v8 = vld [vmem:[#allocation5 + $0x90] ss:$8 sps:$4 sm:$0xff]   ;;  %v820_v9 = vld [vmem:[#allocation5 + $0x24] ss:$8 sps:$4 sm:$0xff]   ;;  %v824_v11 = vld [vmem:[#allocation5 + $0x20] ss:$8 sps:$4 sm:$0xff]  }
  0x68   : > { %332 = vmatprep.subr.bf16.mxu0 %v814_v5  ;;  %494 = vmatprep.subr.bf16.mxu1 %v816_v6  ;;  %v822_v10 = vld [vmem:[#allocation5 + $0xa4] ss:$8 sps:$4 sm:$0xff]   ;;  %v825_v12 = vld [vmem:[#allocation5 + $0xa0] ss:$8 sps:$4 sm:$0xff]   ;;  %v826_v13 = vld [vmem:[#allocation5 + $0x34] ss:$8 sps:$4 sm:$0xff]  }
  0x69   : > { %v828_v14 = vld [vmem:[#allocation5 + $0xb4] ss:$8 sps:$4 sm:$0xff]   ;;  %v830_v15 = vld [vmem:[#allocation5 + $0x30] ss:$8 sps:$4 sm:$0xff]   ;;  %v832_v17 = vld [vmem:[#allocation5 + $0x44] ss:$8 sps:$4 sm:$0xff]  }
  0x6a   : > { %v831_v16 = vld [vmem:[#allocation5 + $0xb0] ss:$8 sps:$4 sm:$0xff]   ;;  %v834_v18 = vld [vmem:[#allocation5 + $0xc4] ss:$8 sps:$4 sm:$0xff]   ;;  %v836_v19 = vld [vmem:[#allocation5 + $0x40] ss:$8 sps:$4 sm:$0xff]  }
  0x6b   : > { %333 = vmatpush1.bf16.msra.mxu0 %v818_v7  ;;  %495 = vmatpush1.bf16.msra.mxu1 %v819_v8  ;;  %v837_v20 = vld [vmem:[#allocation5 + $0xc0] ss:$8 sps:$4 sm:$0xff]   ;;  %v838_v21 = vld [vmem:[#allocation5 + $0x54] ss:$8 sps:$4 sm:$0xff]   ;;  %v842_v23 = vld [vmem:[#allocation5 + $0x50] ss:$8 sps:$4 sm:$0xff]  }
  0x6c   : > { %334 = vmatprep.subr.bf16.mxu0 %v820_v9  ;;  %496 = vmatprep.subr.bf16.mxu1 %v822_v10  ;;  %v840_v22 = vld [vmem:[#allocation5 + $0xd4] ss:$8 sps:$4 sm:$0xff]   ;;  %v843_v24 = vld [vmem:[#allocation5 + $0xd0] ss:$8 sps:$4 sm:$0xff]   ;;  %v844_v25 = vld [vmem:[#allocation5 + $0x64] ss:$8 sps:$4 sm:$0xff]  }
  0x6d   : > { %v846_v26 = vld [vmem:[#allocation5 + $0xe4] ss:$8 sps:$4 sm:$0xff]   ;;  %v848_v27 = vld [vmem:[#allocation5 + $0x60] ss:$8 sps:$4 sm:$0xff]   ;;  %v850_v29 = vld [vmem:[#allocation5 + $0x74] ss:$8 sps:$4 sm:$0xff]  }
  0x6e   : > { %v849_v28 = vld [vmem:[#allocation5 + $0xe0] ss:$8 sps:$4 sm:$0xff]   ;;  %v852_v30 = vld [vmem:[#allocation5 + $0xf4] ss:$8 sps:$4 sm:$0xff]   ;;  %v854_v31 = vld [vmem:[#allocation5 + $0x70] ss:$8 sps:$4 sm:$0xff]  }
  0x6f   : > { %335 = vmatpush1.bf16.msra.mxu0 %v824_v11  ;;  %497 = vmatpush1.bf16.msra.mxu1 %v825_v12  ;;  %v855_v32 = vld [vmem:[#allocation5 + $0xf0] ss:$8 sps:$4 sm:$0xff]   ;;  %v220_v33 = vld [vmem:[%s1217_s25] sm:$0x3]  ;;  %v241_v36 = vshrl.u32 %v240_v35, 7  ;;  %s708_s6 = sshll.u32 %s1000_s15, 2 }
  0x70   : > { %336 = vmatprep.subr.bf16.mxu0 %v826_v13  ;;  %498 = vmatprep.subr.bf16.mxu1 %v828_v14  ;;  %v221_v34 = vpack.c.bf16 %v220_v33, %v220_v33  ;;  %v238_v37 = vld [vmem:[%s1298_s2] sm:$0x3]  ;;  %s709_s5 = sshll.u32 %s1004_s16, 3  ;;  %s218_s28 = scalar_lea.vmem [#allocation7], %s672_s24 }
  0x71   : > { %v242_v38 = vsub.s32 0, %v241_v36  ;;  %v400_v39 = vld [vmem:[%s1298_s2] sm:$0x3]  ;;  %v246_v40 = vsub.s32 1, %v241_v36  ;;  %s559_s30 = sadd.s32 %s709_s5, %s708_s6  ;;  %s562_s9 = sshll.u32 %s218_s28, 4  ;;  %s1237_s9 = int_to_ptr.vmem [resolvable:$true] %s562_s9 }
  0x72   : > { %s710_s7 = sshll.u32 %s559_s30, 5  ;;  %s547_s11 = scalar_lea.sflag [#allocation4], %s1213_s20 }
  0x73   : > { %337 = vmatpush1.bf16.msra.mxu0 %v830_v15  ;;  %499 = vmatpush1.bf16.msra.mxu1 %v831_v16  ;;  %v243_v41 = vrot.slane %v238_v37, %v242_v38  ;;  %v405_v42 = vrot.slane %v400_v39, %v242_v38  ;;  %v247_v43 = vrot.slane %v238_v37, %v246_v40  ;;  %s1242_s10 = scalar_lea.hbm %s1299_s3, %s710_s7  ;;  %s914_s23 = scalar_lea.vmem %s1237_s9, 128 }
  0x74   : > { %338 = vmatprep.subr.bf16.mxu0 %v832_v17  ;;  %500 = vmatprep.subr.bf16.mxu1 %v834_v18  ;;  %v409_v44 = vrot.slane %v400_v39, %v246_v40  ;;  %p915_p6 = scmp.ne.s32.totalorder %s1237_s9, %s914_s23  ;;  %s1023_s8 = smov [#allocation7]  }
  0x75   : > { %s918_s1 = sshll.u32 %s1023_s8, 4  ;;  %s919_s1 = int_to_ptr.vmem [resolvable:$false] %s918_s1 }
  0x76   : > { %p916_p8 = pnand %p915_p6, %p1151_p11  ;;  %s920_s25 = scalar_lea.vmem %s919_s1, 256 }
  0x77   : > { %339 = vmatpush1.bf16.msra.mxu0 %v836_v19  ;;  %501 = vmatpush1.bf16.msra.mxu1 %v837_v20  ;;  %p921_p12 = scmp.lt.s32.totalorder %s1237_s9, %s919_s1  ;;  %p922_p13 = scmp.lt.s32.totalorder %s920_s25, %s914_s23 }
  0x78   : > { %340 = vmatprep.subr.bf16.mxu0 %v838_v21  ;;  %502 = vmatprep.subr.bf16.mxu1 %v840_v22  ;;  %p917_p10 = pneg %p916_p8 }
  0x79   : > { %p923_p3 = por %p922_p13, %p921_p12 }
  0x7b   : > { %341 = vmatpush1.bf16.msra.mxu0 %v842_v23  ;;  %503 = vmatpush1.bf16.msra.mxu1 %v843_v24  ;;  %p924_p7 = pnand %p923_p3, %p917_p10 }
  0x7c   : > { %342 = vmatprep.subr.bf16.mxu0 %v844_v25  ;;  %504 = vmatprep.subr.bf16.mxu1 %v846_v26 }
  0x7f   : > { %343 = vmatpush1.bf16.msra.mxu0 %v848_v27  ;;  %505 = vmatpush1.bf16.msra.mxu1 %v849_v28 }
  0x80   : > { %344 = vmatprep.subr.bf16.mxu0 %v850_v29  ;;  %506 = vmatprep.subr.bf16.mxu1 %v852_v30 }
  0x83   : > { %345 = vmatpush1.bf16.msra.mxu0 %v854_v31  ;;  %507 = vmatpush1.bf16.msra.mxu1 %v855_v32 }
  0x86   : > { %363 = vmatmul.mubr.bf16.vlgmr.msra.gmra.mrb[0].mxu0 %v221_v34  ;;  %525 = vmatmul.mubr.bf16.vlgmr.msra.gmra.mrb[0].mxu1 %v221_v34 }
 0x159   : > { %v364_v45 = vpop.f32.mrb[0].mxu0  ;;  %v526_v46 = vpop.f32.mrb[0].mxu1 }
 0x15a   : > { %v365_v47 = vadd.f32 %v364_v45, %v243_v41  ;;  %v527_v48 = vadd.f32 %v526_v46, %v405_v42  ;;  %v366_v49 = vpop.f32.mrb[1].mxu0  ;;  %v528_v50 = vpop.f32.mrb[1].mxu1 }
 0x15b   : > { %v367_v51 = vadd.f32 %v366_v49, %v247_v43  ;;  %v529_v52 = vadd.f32 %v528_v50, %v409_v44  ;;  %v368_v53 = vpop.f32.mrb[2].mxu0  ;;  %v530_v54 = vpop.f32.mrb[2].mxu1 }
 0x15c   : > { %v369_v55 = vpop.f32.mrb[3].mxu0  ;;  %v531_v56 = vpop.f32.mrb[3].mxu1 }
 0x15d   : > { %v373_v57 = vcombine.low %v365_v47, %v367_v51  ;;  %v535_v58 = vcombine.low %v527_v48, %v529_v52 }
 0x15f   : > { %689 = vst.sshfl [vmem:[%s218_s28] sm:$0x33 pattern:$0x76325410] %v373_v57 }
 0x160   : > { %713 = vst.sshfl [vmem:[%s218_s28 + $0x4] sm:$0x33 pattern:$0x76325410] %v535_v58 }
 0x161   : > { %927 = shalt.err (!%p924_p7)
}
 0x162   : > { %s928_s12 = scalar_lea.hbm %s1242_s10, 128  ;;  %s932_s26 = scalar_lea.hbm %s1299_s3, 512 }
 0x163   : > { %p929_p1 = scmp.ne.s32.totalorder %s1242_s10, %s928_s12  ;;  %p933_p9 = scmp.lt.u32.totalorder %s1242_s10, %s1299_s3 }
 0x164   : > { %p934_p5 = scmp.lt.u32.totalorder %s932_s26, %s928_s12  ;;  %p936_p6 = scmp.lt.u32.totalorder %s928_s12, %s1242_s10 }
 0x165   : > { %p930_p2 = pnand %p929_p1, %p1151_p11 }
 0x166   : > { %p935_p0 = por %p934_p5, %p933_p9 }
 0x167   : > { %p931_p4 = pneg %p930_p2 }
 0x168   : > { %p937_p8 = por %p936_p6, %p935_p0 }
 0x16a   : > { %p938_p10 = pnand %p937_p8, %p931_p4 }
 0x16c   : > { %941 = shalt.err (!%p938_p10)
}
 0x16d   : > { %s1024_s5 = smov 64   ;;  %s1025_s30 = smov 4  }
 0x16e   : > { %720 = dma.vmem_to_hbm [thread:$0]  (%p1151_p11), %s1237_s9, 128, %s1242_s10, %s547_s11, %s1024_s5, %s1024_s5, %s1025_s30  }
 0x16f PF: > { %s1325_s28 = sld [smem:[#allocation11_spill]]  ;;  %s1326_s7 = sld [smem:[#allocation12_spill]] }
 0x170   : > { %p737_p12 = scmp.ge.s32.totalorder %s1016_s19, 2 }
 0x175   : > { %s577_s15 = sand.u32 1, %s1325_s28   ;;  %p1327_p13 = scmp.ne.s32.totalorder %s1326_s7, 0 }
 0x176   : > { %s578_s16 = scalar_lea.sflag [#allocation4], %s577_s15 }
 0x177   : > { %p731_p3 = pnand %p737_p12, %p1327_p13 }
 0x179   : > { %983 = dma.done.wait (!%p731_p3), %s578_s16, 128  }
 0x17a   : > { %985 = vsyncadd (!%p731_p3), %s578_s16, 4294967168  ;;  %s20_s19 = sadd.s32 1, %s1016_s19   ;;  %s1328_s29 = sld [smem:[#allocation13_spill]] }
 0x17b   : > { %p17_p7 = scmp.ge.s32.totalorder %s20_s19, 6   ;;  %s1329_s12 = smov %s992_s13 }
 0x17c   : > { %s1330_s13 = smov %s996_s14  ;;  %s1331_s14 = smov %s1168_s27 }
 0x17d   : > { %s1332_s15 = smov %s1008_s17  ;;  %s1333_s16 = smov %s1012_s18 }
 0x17e   : > { %s1335_s18 = smov %s1341_s4  ;;  %19 = sbr.rel (!%p17_p7) target bundleno = 10 (0xa), region = 83 }
 0x180   : > { %s1334_s17 = smov %s1328_s29 }
 0x185   :  { %583 = vsyncpa [#allocation3], 1 }
 0x186   :  { %585 = vsyncpa [#allocation3 + $0x1], 1 }
 0x187   :  { %586 = vsyncpa [#allocation6], 1 }
 0x188   :  { %587 = vsyncpa [#allocation4], 1 }
 0x189   :  { %589 = vsyncpa [#allocation4 + $0x1], 1 }

</bundles_post_ra>
